<compile_context>
chip_gen: v5e
topology: v5e:2x2
jax: 0.10.0
libtpu: 0.0.40
codegen_flags: <defaults>
</compile_context>

<pallas_src>
import functools
import math

import jax
import jax.numpy as jnp
from jax import lax
from jax.experimental import pallas as pl
from jax.experimental.pallas import tpu as pltpu


def _kernel_stride1(x_ref, o_ref, xp_ref, *, K, pad, L, C, L_out, TL):
    """Optimized stride==1 path, flat lane-dense (time*channel) layout.

    x_ref  : (1, Bb, L * C)          input block (one batch chunk)
    o_ref  : (1, Bb, L_out * C)      output block
    xp_ref : (Bb, (L + 2*pad) * C)   VMEM scratch: replicate-padded sequence
    """
    # ---- fused replicate padding (VMEM only; no extra HBM traffic) ----
    if pad > 0:
        first = x_ref[0, :, :C]                  # (Bb, C)
        last = x_ref[0, :, (L - 1) * C:]         # (Bb, C)
        for p in range(pad):                     # pad is a small static int
            xp_ref[:, p * C:(p + 1) * C] = first
            xp_ref[:, (pad + L + p) * C:(pad + L + p + 1) * C] = last
    xp_ref[:, pad * C:(pad + L) * C] = x_ref[0]

    # ---- windowed mean; inner time tiles keep the f32 accumulator small ----
    inv_k = 1.0 / K
    for r0 in range(0, L_out, TL):               # static unroll, few tiles
        tl = min(TL, L_out - r0)
        n = tl * C
        # k-th window term is just a lane-shifted slice of the padded scratch;
        # read it straight off the Ref (no materialized copy of the whole tile).
        acc = xp_ref[:, r0 * C:r0 * C + n].astype(jnp.float32)
        for k in range(1, K):
            s = (r0 + k) * C
            acc = acc + xp_ref[:, s:s + n].astype(jnp.float32)
        o_ref[0, :, r0 * C:r0 * C + n] = (acc * inv_k).astype(o_ref.dtype)


def _kernel_strided(x_ref, o_ref, xp_ref, *, K, stride, pad, L, C, L_out, TL):
    """General-stride fallback (Autoformer/DLinear always use stride == 1).

    x_ref  : (1, Bb, L, C);  o_ref : (1, Bb, L_out, C);  xp_ref : (Bb, L+2p, C)
    """
    Bb = xp_ref.shape[0]
    if pad > 0:
        xp_ref[:, :pad, :] = jnp.broadcast_to(x_ref[0, :, :1, :], (Bb, pad, C))
        xp_ref[:, pad + L:, :] = jnp.broadcast_to(x_ref[0, :, L - 1:, :],
                                                  (Bb, pad, C))
    xp_ref[:, pad:pad + L, :] = x_ref[0]

    inv_k = 1.0 / K
    for r0 in range(0, L_out, TL):
        tl = min(TL, L_out - r0)
        span = (tl - 1) * stride + 1
        acc = jnp.zeros((Bb, tl, C), jnp.float32)
        for k in range(K):
            start = r0 * stride + k
            win = xp_ref[:, start:start + span, :]
            win = lax.slice(win, (0, 0, 0), win.shape, (1, stride, 1))
            acc = acc + win.astype(jnp.float32)
        o_ref[0, :, r0:r0 + tl, :] = (acc * inv_k).astype(o_ref.dtype)


def moving_avg(x, kernel_size, stride):
    """x: (B, L, C). Returns (B, L_out, C) moving average along the time axis."""
    B, L, C = x.shape
    K = int(kernel_size)
    stride = int(stride)
    pad = (K - 1) // 2
    L_pad = L + 2 * pad
    L_out = (L_pad - K) // stride + 1
    assert K >= 1 and stride >= 1 and L_out >= 1
    itemsize = jnp.dtype(x.dtype).itemsize

    # ---- batch chunking: >= ~1 MiB per grid step when possible, >= 8 batch rows
    #      for sublane density, and >= 2 grid steps for v7x megacore if B allows.
    per_batch_bytes = max(1, L * C * itemsize)
    b_blk = min(B, max(8, -(-(1 << 20) // per_batch_bytes)))
    if B >= 16:
        b_blk = min(b_blk, B // 2)
    while B % b_blk:                 # exact blocks (no partial batch blocks)
        b_blk -= 1
    num_b = B // b_blk

    # ---- inner time tile: bound the in-vreg f32 accumulator to ~64 KiB so the
    #      K-term loop never spills, independent of sequence length.
    TL = max(1, (64 * 1024) // max(1, b_blk * C * 4 * stride))
    TL = min(TL, L_out)
    if stride == 1 and TL < L_out and C % 128 != 0:
        step = 128 // math.gcd(128, C)          # keep per-tile stores lane-aligned
        TL = max(step, (TL // step) * step)
    TL = min(TL, L_out)
    while TL < L_out and -(-L_out // TL) > 32:  # bound the static unroll
        TL = min(L_out, TL * 2)

    # ---- explicit VMEM budget (double-buffered in/out blocks + padded scratch).
    block_bytes = 2 * itemsize * b_blk * (L + L_out) * C
    scratch_bytes = itemsize * max(b_blk, 8) * (L_pad + 8) * max(C, 128)
    vmem_limit = max(16 << 20, int(1.5 * (block_bytes + scratch_bytes)) + (4 << 20))

    params = pltpu.CompilerParams(
        dimension_semantics=("parallel",),
        vmem_limit_bytes=vmem_limit,
    )

    if stride == 1:
        # Flat (time*channel) layout; reshapes below are free (no transpose).
        kern = functools.partial(_kernel_stride1, K=K, pad=pad, L=L, C=C,
                                 L_out=L_out, TL=TL)
        out = pl.pallas_call(
            kern,
            out_shape=jax.ShapeDtypeStruct((num_b, b_blk, L_out * C), x.dtype),
            grid=(num_b,),
            in_specs=[pl.BlockSpec((1, b_blk, L * C), lambda b: (b, 0, 0))],
            out_specs=pl.BlockSpec((1, b_blk, L_out * C), lambda b: (b, 0, 0)),
            scratch_shapes=[pltpu.VMEM((b_blk, L_pad * C), x.dtype)],
            compiler_params=params,
        )(x.reshape(num_b, b_blk, L * C))
        return out.reshape(B, L_out, C)

    kern = functools.partial(_kernel_strided, K=K, stride=stride, pad=pad,
                             L=L, C=C, L_out=L_out, TL=TL)
    out = pl.pallas_call(
        kern,
        out_shape=jax.ShapeDtypeStruct((num_b, b_blk, L_out, C), x.dtype),
        grid=(num_b,),
        in_specs=[pl.BlockSpec((1, b_blk, L, C), lambda b: (b, 0, 0, 0))],
        out_specs=pl.BlockSpec((1, b_blk, L_out, C), lambda b: (b, 0, 0, 0)),
        scratch_shapes=[pltpu.VMEM((b_blk, L_pad, C), x.dtype)],
        compiler_params=params,
    )(x.reshape(num_b, b_blk, L, C))
    return out.reshape(B, L_out, C)


def _moving_avg_ref(x, kernel_size, stride):
    """Pure-JAX reference mirroring the PyTorch forward."""
    pad = (kernel_size - 1) // 2
    front = jnp.repeat(x[:, :1, :], pad, axis=1)
    end = jnp.repeat(x[:, -1:, :], pad, axis=1)
    xp = jnp.concatenate([front, x, end], axis=1)
    L_pad = xp.shape[1]
    L_out = (L_pad - kernel_size) // stride + 1
    outs = []
    for t in range(L_out):
        outs.append(jnp.mean(xp[:, t * stride: t * stride + kernel_size, :], axis=1))
    return jnp.stack(outs, axis=1)


if __name__ == "__main__":
    key = jax.random.PRNGKey(0)

    configs = [
        # (B, L, C, kernel_size, stride)
        (2, 8, 32, 5, 1),    # small demo shape, main (stride==1) path
        (3, 16, 7, 25, 1),   # DLinear-like: 7 channels, Autoformer kernel 25
        (2, 10, 16, 4, 2),   # even kernel + stride>1 fallback path
    ]
    for i, (B, L, C, K, S) in enumerate(configs):
        k = jax.random.fold_in(key, i)
        x = jax.random.normal(k, (B, L, C), dtype=jnp.float32)
        out = jax.block_until_ready(moving_avg(x, K, S))
        ref = _moving_avg_ref(x, K, S)
        assert out.shape == ref.shape, (out.shape, ref.shape)
        assert jnp.allclose(out, ref, atol=1e-5, rtol=1e-5), (B, L, C, K, S)

    print("KERNEL_OK")
</pallas_src>

<mosaic_0001>
module attributes {stable_mosaic.version = 11 : i64} {
  func.func @_kernel_stride1(%arg0: i32, %arg1: memref<1x2x256xf32, #tpu.memory_space<vmem>>, %arg2: memref<1x2x256xf32, #tpu.memory_space<vmem>>, %arg3: memref<2x384xf32, #tpu.memory_space<vmem>>) attributes {dimension_semantics = [#tpu.dimension_semantics<parallel>], iteration_bounds = array<i64: 1>, scalar_prefetch = 0 : i64, scratch_operands = 1 : i64, tpu.core_type = #tpu.core_type<tc>, window_params = [{transform_indices = @transform_0, window_bounds = array<i64: 1, 2, 256>}, {transform_indices = @transform_1, window_bounds = array<i64: 1, 2, 256>}]} {
    %c0 = arith.constant 0 : index
    %c0_0 = arith.constant 0 : index
    %c0_1 = arith.constant 0 : index
    %0 = vector.load %arg1[%c0, %c0_0, %c0_1] : memref<1x2x256xf32, #tpu.memory_space<vmem>>, vector<1x2x32xf32>
    %1 = vector.shape_cast %0 : vector<1x2x32xf32> to vector<2x32xf32>
    %c0_2 = arith.constant 0 : index
    %c0_3 = arith.constant 0 : index
    %c224 = arith.constant 224 : index
    %2 = vector.load %arg1[%c0_2, %c0_3, %c224] : memref<1x2x256xf32, #tpu.memory_space<vmem>>, vector<1x2x32xf32>
    %3 = vector.shape_cast %2 : vector<1x2x32xf32> to vector<2x32xf32>
    %c0_4 = arith.constant 0 : index
    %c0_5 = arith.constant 0 : index
    %4 = vector.load %arg3[%c0_4, %c0_5] : memref<2x384xf32, #tpu.memory_space<vmem>>, vector<2x32xf32>
    tpu.vector_store %arg3[%c0_4, %c0_5], %1 {strides = array<i32>} : memref<2x384xf32, #tpu.memory_space<vmem>>, vector<2x32xf32>,
    %c0_6 = arith.constant 0 : index
    %c320 = arith.constant 320 : index
    %5 = vector.load %arg3[%c0_6, %c320] : memref<2x384xf32, #tpu.memory_space<vmem>>, vector<2x32xf32>
    tpu.vector_store %arg3[%c0_6, %c320], %3 {strides = array<i32>} : memref<2x384xf32, #tpu.memory_space<vmem>>, vector<2x32xf32>,
    %c0_7 = arith.constant 0 : index
    %c32 = arith.constant 32 : index
    %6 = vector.load %arg3[%c0_7, %c32] : memref<2x384xf32, #tpu.memory_space<vmem>>, vector<2x32xf32>
    tpu.vector_store %arg3[%c0_7, %c32], %1 {strides = array<i32>} : memref<2x384xf32, #tpu.memory_space<vmem>>, vector<2x32xf32>,
    %c0_8 = arith.constant 0 : index
    %c352 = arith.constant 352 : index
    %7 = vector.load %arg3[%c0_8, %c352] : memref<2x384xf32, #tpu.memory_space<vmem>>, vector<2x32xf32>
    tpu.vector_store %arg3[%c0_8, %c352], %3 {strides = array<i32>} : memref<2x384xf32, #tpu.memory_space<vmem>>, vector<2x32xf32>,
    %c0_9 = arith.constant 0 : index
    %c0_10 = arith.constant 0 : index
    %c0_11 = arith.constant 0 : index
    %8 = vector.load %arg1[%c0_9, %c0_10, %c0_11] : memref<1x2x256xf32, #tpu.memory_space<vmem>>, vector<1x2x256xf32>
    %9 = vector.shape_cast %8 : vector<1x2x256xf32> to vector<2x256xf32>
    %c0_12 = arith.constant 0 : index
    %c64 = arith.constant 64 : index
    %10 = vector.load %arg3[%c0_12, %c64] : memref<2x384xf32, #tpu.memory_space<vmem>>, vector<2x256xf32>
    tpu.vector_store %arg3[%c0_12, %c64], %9 {strides = array<i32>} : memref<2x384xf32, #tpu.memory_space<vmem>>, vector<2x256xf32>,
    %c0_13 = arith.constant 0 : index
    %c0_14 = arith.constant 0 : index
    %11 = vector.load %arg3[%c0_13, %c0_14] : memref<2x384xf32, #tpu.memory_space<vmem>>, vector<2x256xf32>
    %c0_15 = arith.constant 0 : index
    %c32_16 = arith.constant 32 : index
    %12 = vector.load %arg3[%c0_15, %c32_16] : memref<2x384xf32, #tpu.memory_space<vmem>>, vector<2x256xf32>
    %13 = arith.addf %11, %12 : vector<2x256xf32>
    %c0_17 = arith.constant 0 : index
    %c64_18 = arith.constant 64 : index
    %14 = vector.load %arg3[%c0_17, %c64_18] : memref<2x384xf32, #tpu.memory_space<vmem>>, vector<2x256xf32>
    %15 = arith.addf %13, %14 : vector<2x256xf32>
    %c0_19 = arith.constant 0 : index
    %c96 = arith.constant 96 : index
    %16 = vector.load %arg3[%c0_19, %c96] : memref<2x384xf32, #tpu.memory_space<vmem>>, vector<2x256xf32>
    %17 = arith.addf %15, %16 : vector<2x256xf32>
    %c0_20 = arith.constant 0 : index
    %c128 = arith.constant 128 : index
    %18 = vector.load %arg3[%c0_20, %c128] : memref<2x384xf32, #tpu.memory_space<vmem>>, vector<2x256xf32>
    %19 = arith.addf %17, %18 : vector<2x256xf32>
    %cst = arith.constant 2.000000e-01 : f32
    %20 = vector.broadcast %cst : f32 to vector<2x256xf32>
    %21 = arith.mulf %19, %20 : vector<2x256xf32>
    %c0_21 = arith.constant 0 : index
    %c0_22 = arith.constant 0 : index
    %c0_23 = arith.constant 0 : index
    %22 = vector.load %arg2[%c0_21, %c0_22, %c0_23] : memref<1x2x256xf32, #tpu.memory_space<vmem>>, vector<1x2x256xf32>
    %23 = vector.shape_cast %22 : vector<1x2x256xf32> to vector<2x256xf32>
    %24 = vector.shape_cast %21 : vector<2x256xf32> to vector<1x2x256xf32>
    tpu.vector_store %arg2[%c0_21, %c0_22, %c0_23], %24 {strides = array<i32>} : memref<1x2x256xf32, #tpu.memory_space<vmem>>, vector<1x2x256xf32>,
    return
  }
  func.func @transform_0(%arg0: i32) -> (i32, i32, i32) {
    %c0_i32 = arith.constant 0 : i32
    %c0_i32_0 = arith.constant 0 : i32
    %c0_i32_1 = arith.constant 0 : i32
    return %arg0, %c0_i32, %c0_i32_0 : i32, i32, i32
  }
  func.func @transform_1(%arg0: i32) -> (i32, i32, i32) {
    %c0_i32 = arith.constant 0 : i32
    %c0_i32_0 = arith.constant 0 : i32
    %c0_i32_1 = arith.constant 0 : i32
    return %arg0, %c0_i32, %c0_i32_0 : i32, i32, i32
  }
}

</mosaic_0001>

<bundles_post_ra>
// kernel: tpu_custom_call.1
= control target key start
LH: loop header
LB: loop body
LE: loop exit
PB: predicated region body
PF: predicated region fallthrough
CT: control target
= control target key end

     0   :  { %6 = vsyncpa [#allocation4], 0  ;;  %s179_s0 = inlined_call_operand.hbm [shape: f32[1,2,256], index: 0, kind: input, shape index: {}]   ;;  %s180_s1 = inlined_call_operand.hbm [shape: f32[1,2,256], index: 1, kind: output, shape index: {}]  }
   0x1   :  { %7 = vsyncpa [#allocation5], 0  ;;  %s13_s8 = sshll.u32 %s179_s0, 4  ;;  %s156_s9 = smov [#allocation3]   ;;  %s14_s8 = int_to_ptr.hbm [resolvable:$true] %s13_s8 }
   0x2   :  { %s15_s10 = sshll.u32 %s156_s9, 4  ;;  %s16_s10 = int_to_ptr.vmem [resolvable:$true] %s15_s10 }
   0x3   :  { %18 = dma.hbm_to_vmem [thread:$0]  %s14_s8, 64, %s16_s10, [#allocation4]  }
   0x4   :  { %152 = dma.done.wait [#allocation4], 64  }
   0x5   :  { %153 = vsyncadd [#allocation4], 4294967232  ;;  %vm25_vm0 = vcmask 254976   ;;  %v41_v0 = vld [vmem:[#allocation3] sm:$0xf]  ;;  %s157_s11 = smov 64  }
   0x6   :  { %v23_v1 = vld [vmem:[#allocation3] sm:$0x3]  ;;  %43 = vrot.lane.b32.xlu0 %v41_v0, %s157_s11  ;;  %s158_s12 = smov 32   ;;  %v24_v2 = vld [vmem:[#allocation3 + $0x2] sm:$0x3]  ;;  %s159_s13 = smov 96  }
   0x7   :  { %34 = vrot.lane.b32.xlu1 %v23_v1, %s158_s12  ;;  %26 = vst.msk [vmem:[#allocation2] sm:$0x3] %vm25_vm0, %v23_v1  ;;  %vm37_vm1 = vcmask 517376   ;;  %vm49_vm2 = vcmask 1041920   ;;  %vm50_vm3 = vcmask 1043458   ;;  %vm52_vm5 = vcmask 521220  }
   0x8   :  { %vm51_vm4 = vmor %vm50_vm3, %vm49_vm2  ;;  %vm31_vm6 = vcmask 779776   ;;  %vm46_vm7 = vcmask 523264   ;;  %vm39_vm8 = vcmask 1042176   ;;  %vm61_vm10 = vcmask 785408   ;;  %s160_s0 = smov [#allocation6]   ;;  %s89_s17 = sshll.u32 %s180_s1, 4  ;;  %s90_s17 = int_to_ptr.hbm [resolvable:$true] %s89_s17 }
   0x9   :  { %vm53_vm9 = vmor %vm52_vm5, %vm51_vm4  ;;  %vm74_vm11 = vcmask 261120   ;;  %s87_s14 = sshll.u32 %s160_s0, 4  ;;  %s88_s14 = int_to_ptr.vmem [resolvable:$true] %s87_s14 }
   0xe   :  { %28 = vrot.lane.b32.xlu0 %v24_v2, %s159_s13 }
  0x78   :  { %v44_v3 = vpop.permute.xlu0 %43 }
  0x79   :  { %v35_v4 = vpop.permute.xlu1 %34  ;;  %v45_v5 = vrot.slane %v44_v3, 6 }
  0x7a   :  { %38 = vst.msk [vmem:[#allocation2] sm:$0x3] %vm37_vm1, %v35_v4 }
  0x7b   :  { %v47_v7 = vsel %vm46_vm7, %v45_v5, %v44_v3 }
  0x80   :  { %v29_v6 = vpop.permute.xlu0 %28 }
  0x81   :  { %32 = vst.msk [vmem:[#allocation2 + $0x4] sm:$0x3] %vm31_vm6, %v29_v6 }
  0x82   :  { %40 = vst.msk [vmem:[#allocation2 + $0x4] sm:$0x3] %vm39_vm8, %v24_v2 }
  0x83   :  { %54 = vst.msk [vmem:[#allocation2] sm:$0x3f] %vm53_vm9, %v47_v7 }
  0x8a   :  { %v56_v8 = vld [vmem:[#allocation2] sm:$0x3f] }
  0x8b   :  { %65 = vrot.lane.b32.xlu2 %v56_v8, %s157_s11  ;;  %58 = vrot.lane.b32.xlu1 %v56_v8, %s159_s13  ;;  %v55_v15 = vld [vmem:[#allocation2] sm:$0xf] }
  0x8c   :  { %v78_v22 = vld [vmem:[#allocation2 + $0x2] sm:$0xf] }
  0x93   :  { %71 = vrot.lane.b32.xlu2 %v56_v8, %s158_s12 }
  0xe5   :  { %v66_v9 = vpop.permute.xlu2 %65 }
  0xe6   :  { %v67_v12 = vrot.slane %v66_v9, 2 }
  0xe8   :  { %v68_v18 = vsel %vm46_vm7, %v66_v9, %v67_v12 }
  0xed   :  { %v72_v10 = vpop.permute.xlu2 %71 }
  0xee   :  { %v73_v14 = vrot.slane %v72_v10, 2 }
  0xf0   :  { %v75_v20 = vsel %vm74_vm11, %v72_v10, %v73_v14 }
  0xfd   :  { %v59_v11 = vpop.permute.xlu1 %58 }
  0xfe   :  { %v60_v13 = vrot.slane %v59_v11, 2 }
 0x100   :  { %v62_v16 = vsel %vm61_vm10, %v59_v11, %v60_v13 }
 0x101   :  { %v64_v17 = vadd.f32 %v62_v16, %v55_v15 }
 0x103   :  { %v70_v19 = vadd.f32 %v68_v18, %v64_v17 }
 0x105   :  { %v77_v21 = vadd.f32 %v75_v20, %v70_v19 }
 0x107   :  { %v79_v23 = vadd.f32 %v78_v22, %v77_v21 }
 0x109   :  { %v80_v24 = vmul.f32 0.2, %v79_v23 }
 0x10b   :  { %81 = vst [vmem:[#allocation6] sm:$0xf] %v80_v24 }
 0x10c   :  { %92 = dma.vmem_to_hbm [thread:$0]  %s88_s14, 64, %s90_s17, [#allocation5]  }
 0x10d   :  { %154 = dma.done.wait [#allocation5], 64  }
 0x10e   :  { %155 = vsyncadd [#allocation5], 4294967232 }
 0x10f   :  { %97 = vsyncpa [#allocation4], 1 }
 0x110   :  { %98 = vsyncpa [#allocation5], 1 }

</bundles_post_ra>
